<compile_context>
chip_gen: v6e
topology: v6e:2x2x1
jax: 0.10.0
libtpu: 0.0.40
codegen_flags: <defaults>
</compile_context>

<pallas_src>
import jax
import jax.numpy as jnp
import numpy as np
from jax.experimental import pallas as pl
from jax.experimental.pallas import tpu as pltpu


def _round_up(x, m):
    return (x + m - 1) // m * m


def _block_diag(w):
    """(E, Fi, Fo) -> block-diagonal (E*Fi, E*Fo)."""
    E, Fi, Fo = w.shape
    eye = jnp.eye(E, dtype=w.dtype)
    return jnp.einsum('ef,eij->eifj', eye, w).reshape(E * Fi, E * Fo)


# ----------------------------------------------------------------------------
# Parameter restructuring (done once in the wrapper, outside the kernel)
# ----------------------------------------------------------------------------
def prepare_params(backbone_params, out_w, out_b, min_logstd, max_logstd,
                   obs_dim):
    """Pack ensemble params into lane-dense slabs consumed by the kernel."""
    w1, b1 = backbone_params[0]
    E, din, H = w1.shape
    out_half = out_w.shape[-1] // 2
    two_o = 2 * out_half
    fused_w = E * two_o
    padded = max(_round_up(fused_w, 128), 128)   # lane-dense output width

    # Layer 1: x is shared -> concatenate member weights along the output axis.
    w1_cat = jnp.transpose(w1, (1, 0, 2)).reshape(din, E * H)   # (din, E*H)
    b1_cat = b1.reshape(1, E * H)

    # Later backbone layers: block-diagonal (E*H, E*H).
    mids = tuple((_block_diag(w), b.reshape(1, E * H))
                 for (w, b) in backbone_params[1:])

    # Output layer: block-diagonal, padded to 128-lane multiple.
    w_out_bd = _block_diag(out_w)                               # (E*H, E*2*O)
    w_out_pad = jnp.zeros((E * H, padded), out_w.dtype)
    w_out_pad = w_out_pad.at[:, :fused_w].set(w_out_bd)
    b_out_pad = jnp.zeros((1, padded), out_b.dtype)
    b_out_pad = b_out_pad.at[:, :fused_w].set(out_b.reshape(1, fused_w))

    # soft_clamp bounds tiled to the fused (mu|logstd) per-member chunk layout.
    chunk_min = jnp.concatenate([min_logstd, min_logstd])       # (2*O,)
    chunk_max = jnp.concatenate([max_logstd, max_logstd])
    min_tile = jnp.zeros((1, padded), jnp.float32)
    min_tile = min_tile.at[:, :fused_w].set(jnp.tile(chunk_min, E)[None])
    max_tile = jnp.zeros((1, padded), jnp.float32)
    max_tile = max_tile.at[:, :fused_w].set(jnp.tile(chunk_max, E)[None])

    # Residual scatter: mu_obs += x[:, :obs_dim], expressed as x @ resid so the
    # kernel needs no lane-shuffles.  resid[j, e*2*O + j] = 1 for j < obs_dim.
    resid_np = np.zeros((din, padded), np.float32)
    for e in range(E):
        for j in range(obs_dim):
            resid_np[j, e * two_o + j] = 1.0
    resid = jnp.asarray(resid_np)

    return dict(w1=w1_cat, b1=b1_cat, mids=mids,
                w_out=w_out_pad, b_out=b_out_pad, resid=resid,
                min_tile=min_tile, max_tile=max_tile,
                E=E, H=H, din=din, out_half=out_half, padded=padded)


# ----------------------------------------------------------------------------
# Kernel
# ----------------------------------------------------------------------------
def _make_kernel(num_mid_layers, out_half):
    two_o = 2 * out_half

    def kernel(x_ref, w1_ref, b1_ref, *rest):
        # rest: (w_bd, b)*num_mid, w_out, b_out, resid, min_t, max_t, out_ref
        x = x_ref[...]                                            # (TB, din)
        h = jnp.dot(x, w1_ref[...], preferred_element_type=jnp.float32)
        h = h + b1_ref[...]
        h = h * jax.nn.sigmoid(h)                                 # Swish

        idx = 0
        for _ in range(num_mid_layers):
            w = rest[idx][...]                                    # (E*H, E*H)
            b = rest[idx + 1][...]                                # (1, E*H)
            idx += 2
            h = jnp.dot(h, w, preferred_element_type=jnp.float32) + b
            h = h * jax.nn.sigmoid(h)

        w_out = rest[idx][...]                                    # (E*H, P)
        b_out = rest[idx + 1][...]                                # (1, P)
        resid_w = rest[idx + 2][...]                              # (din, P)
        min_t = rest[idx + 3][...]                                # (1, P)
        max_t = rest[idx + 4][...]                                # (1, P)
        out_ref = rest[idx + 5]

        o = jnp.dot(h, w_out, preferred_element_type=jnp.float32) + b_out

        # mode == 'local': obs residual applied via one small MXU matmul
        # (scatter matrix), no in-kernel concatenates or lane rolls.
        mu = o + jnp.dot(x, resid_w, preferred_element_type=jnp.float32)

        # soft_clamp(logstd, min, max) -> std, applied to every lane; the mu
        # lanes are discarded by the select below (values stay bounded).
        ls = max_t - jax.nn.softplus(max_t - o)
        ls = min_t + jax.nn.softplus(ls - min_t)
        std = jnp.exp(ls)

        lane = jax.lax.broadcasted_iota(jnp.int32, o.shape, 1)
        is_mu = (lane % two_o) < out_half
        out_ref[...] = jnp.where(is_mu, mu, std)   # one 128-lane-dense store

    return kernel


# ----------------------------------------------------------------------------
# Wrapper
# ----------------------------------------------------------------------------
def ensemble_transition_forward(obs_action, packed, *, batch_block=512):
    """Returns (mu, std), each of shape (E, B, obs_dim + with_reward)."""
    B, din = obs_action.shape
    E, out_half, padded = packed['E'], packed['out_half'], packed['padded']
    two_o = 2 * out_half
    fused_w = E * two_o
    num_mid = len(packed['mids'])

    tb = B if B <= batch_block else batch_block
    grid = (pl.cdiv(B, tb),)

    def full(a):
        return pl.BlockSpec(a.shape, lambda i, _nd=a.ndim: (0,) * _nd)

    inputs = [obs_action, packed['w1'], packed['b1']]
    in_specs = [pl.BlockSpec((tb, din), lambda i: (i, 0)),
                full(packed['w1']), full(packed['b1'])]
    for (w, b) in packed['mids']:
        inputs += [w, b]
        in_specs += [full(w), full(b)]
    inputs += [packed['w_out'], packed['b_out'], packed['resid'],
               packed['min_tile'], packed['max_tile']]
    in_specs += [full(packed['w_out']), full(packed['b_out']),
                 full(packed['resid']),
                 full(packed['min_tile']), full(packed['max_tile'])]

    kernel = _make_kernel(num_mid, out_half)
    fused = pl.pallas_call(
        kernel,
        out_shape=jax.ShapeDtypeStruct((B, padded), jnp.float32),
        grid_spec=pltpu.PrefetchScalarGridSpec(
            num_scalar_prefetch=0,
            grid=grid,
            in_specs=in_specs,
            out_specs=pl.BlockSpec((tb, padded), lambda i: (i, 0)),
        ),
        compiler_params=pltpu.CompilerParams(
            dimension_semantics=("parallel",)),
    )(*inputs)

    # Free XLA layout work: drop padding, split fused -> mu/std of (E, B, O).
    fused = fused[:, :fused_w].reshape(B, E, two_o).transpose(1, 0, 2)
    mu = fused[..., :out_half]
    std = fused[..., out_half:]
    return mu, std


# ----------------------------------------------------------------------------
# Pure-JAX reference mirroring the PyTorch forward (2-D input case)
# ----------------------------------------------------------------------------
def reference_forward(obs_action, backbone_params, out_w, out_b,
                      min_logstd, max_logstd, obs_dim):
    w0, b0 = backbone_params[0]
    h = jnp.einsum('ij,bjk->bik', obs_action, w0, precision='highest') + b0
    h = h * jax.nn.sigmoid(h)
    for (w, b) in backbone_params[1:]:
        h = jnp.einsum('bij,bjk->bik', h, w, precision='highest') + b
        h = h * jax.nn.sigmoid(h)
    out = jnp.einsum('bij,bjk->bik', h, out_w, precision='highest') + out_b
    out_half = out.shape[-1] // 2
    mu, logstd = out[..., :out_half], out[..., out_half:]
    logstd = max_logstd - jax.nn.softplus(max_logstd - logstd)
    logstd = min_logstd + jax.nn.softplus(logstd - min_logstd)
    obs = mu[..., :obs_dim] + obs_action[None, :, :obs_dim]
    mu = jnp.concatenate([obs, mu[..., obs_dim:]], axis=-1)
    return mu, jnp.exp(logstd)


if __name__ == "__main__":
    # Config consistent with EnsembleTransition(obs_dim, action_dim,
    # hidden_features, hidden_layers, ensemble_size=7, mode='local',
    # with_reward=True).
    obs_dim, action_dim = 8, 8
    hidden_features, hidden_layers = 32, 2
    ensemble_size = 7
    batch = 16
    out_half = obs_dim + 1          # with_reward=True
    din = obs_dim + action_dim

    key = jax.random.PRNGKey(0)
    keys = jax.random.split(key, hidden_layers + 2)

    # Deterministic params (trunc_normal approximated by normal,
    # std = 1 / (2*sqrt(in_features)); biases zero, as in EnsembleLinear).
    backbone_params = []
    in_f = din
    for i in range(hidden_layers):
        std = 1.0 / (2.0 * (in_f ** 0.5))
        w = std * jax.random.normal(
            keys[i], (ensemble_size, in_f, hidden_features), dtype=jnp.float32)
        b = jnp.zeros((ensemble_size, 1, hidden_features), dtype=jnp.float32)
        backbone_params.append((w, b))
        in_f = hidden_features

    std = 1.0 / (2.0 * (hidden_features ** 0.5))
    out_w = std * jax.random.normal(
        keys[hidden_layers],
        (ensemble_size, hidden_features, 2 * out_half), dtype=jnp.float32)
    out_b = jnp.zeros((ensemble_size, 1, 2 * out_half), dtype=jnp.float32)

    max_logstd = jnp.ones((out_half,), dtype=jnp.float32) * 0.25
    min_logstd = jnp.ones((out_half,), dtype=jnp.float32) * -5.0

    obs_action = jax.random.normal(keys[hidden_layers + 1], (batch, din),
                                   dtype=jnp.float32)

    packed = prepare_params(backbone_params, out_w, out_b,
                            min_logstd, max_logstd, obs_dim)
    mu, std_out = ensemble_transition_forward(obs_action, packed)
    mu, std_out = jax.block_until_ready((mu, std_out))

    mu_ref, std_ref = reference_forward(
        obs_action, backbone_params, out_w, out_b,
        min_logstd, max_logstd, obs_dim)

    np.testing.assert_allclose(np.asarray(mu), np.asarray(mu_ref),
                               rtol=1e-3, atol=1e-3)
    np.testing.assert_allclose(np.asarray(std_out), np.asarray(std_ref),
                               rtol=1e-3, atol=1e-3)

    print("KERNEL_OK")
</pallas_src>

<mosaic_0001>
module attributes {stable_mosaic.version = 11 : i64} {
  func.func @kernel(%arg0: i32, %arg1: memref<16x16xf32, #tpu.memory_space<vmem>>, %arg2: memref<16x224xf32, #tpu.memory_space<vmem>>, %arg3: memref<1x224xf32, #tpu.memory_space<vmem>>, %arg4: memref<224x224xf32, #tpu.memory_space<vmem>>, %arg5: memref<1x224xf32, #tpu.memory_space<vmem>>, %arg6: memref<224x128xf32, #tpu.memory_space<vmem>>, %arg7: memref<1x128xf32, #tpu.memory_space<vmem>>, %arg8: memref<16x128xf32, #tpu.memory_space<vmem>>, %arg9: memref<1x128xf32, #tpu.memory_space<vmem>>, %arg10: memref<1x128xf32, #tpu.memory_space<vmem>>, %arg11: memref<16x128xf32, #tpu.memory_space<vmem>>) attributes {dimension_semantics = [#tpu.dimension_semantics<parallel>], iteration_bounds = array<i64: 1>, scalar_prefetch = 0 : i64, scratch_operands = 0 : i64, tpu.core_type = #tpu.core_type<tc>, window_params = [{transform_indices = @transform_0, window_bounds = array<i64: 16, 16>}, {pipeline_mode = #tpu.pipeline_mode<synchronous>, transform_indices = @transform_1, window_bounds = array<i64: 16, 224>}, {pipeline_mode = #tpu.pipeline_mode<synchronous>, transform_indices = @transform_2, window_bounds = array<i64: 1, 224>}, {pipeline_mode = #tpu.pipeline_mode<synchronous>, transform_indices = @transform_3, window_bounds = array<i64: 224, 224>}, {pipeline_mode = #tpu.pipeline_mode<synchronous>, transform_indices = @transform_4, window_bounds = array<i64: 1, 224>}, {pipeline_mode = #tpu.pipeline_mode<synchronous>, transform_indices = @transform_5, window_bounds = array<i64: 224, 128>}, {pipeline_mode = #tpu.pipeline_mode<synchronous>, transform_indices = @transform_6, window_bounds = array<i64: 1, 128>}, {pipeline_mode = #tpu.pipeline_mode<synchronous>, transform_indices = @transform_7, window_bounds = array<i64: 16, 128>}, {pipeline_mode = #tpu.pipeline_mode<synchronous>, transform_indices = @transform_8, window_bounds = array<i64: 1, 128>}, {pipeline_mode = #tpu.pipeline_mode<synchronous>, transform_indices = @transform_9, window_bounds = array<i64: 1, 128>}, {transform_indices = @transform_10, window_bounds = array<i64: 16, 128>}]} {
    %c0 = arith.constant 0 : index
    %c0_0 = arith.constant 0 : index
    %0 = vector.load %arg1[%c0, %c0_0] : memref<16x16xf32, #tpu.memory_space<vmem>>, vector<16x16xf32>
    %c0_1 = arith.constant 0 : index
    %c0_2 = arith.constant 0 : index
    %1 = vector.load %arg2[%c0_1, %c0_2] : memref<16x224xf32, #tpu.memory_space<vmem>>, vector<16x224xf32>
    %cst = arith.constant dense<0.000000e+00> : vector<16x224xf32>
    %2 = tpu.matmul %0, %1, %cst {dimension_numbers = #tpu.dot_dimension_numbers<[1], [0], [0], [1], [0, 0, 1, 1], [], []>} : vector<16x16xf32>, vector<16x224xf32>, vector<16x224xf32> -> vector<16x224xf32>
    %c0_3 = arith.constant 0 : index
    %c0_4 = arith.constant 0 : index
    %3 = vector.load %arg3[%c0_3, %c0_4] : memref<1x224xf32, #tpu.memory_space<vmem>>, vector<1x224xf32>
    %4 = vector.broadcast %3 : vector<1x224xf32> to vector<16x224xf32>
    %5 = arith.addf %2, %4 : vector<16x224xf32>
    %6 = arith.negf %5 : vector<16x224xf32>
    %7 = math.exp %6 : vector<16x224xf32>
    %cst_5 = arith.constant 1.000000e+00 : f32
    %8 = vector.broadcast %cst_5 : f32 to vector<16x224xf32>
    %9 = arith.addf %8, %7 : vector<16x224xf32>
    %10 = arith.divf %8, %9 : vector<16x224xf32>
    %11 = arith.mulf %5, %10 : vector<16x224xf32>
    %c0_6 = arith.constant 0 : index
    %c0_7 = arith.constant 0 : index
    %12 = vector.load %arg4[%c0_6, %c0_7] : memref<224x224xf32, #tpu.memory_space<vmem>>, vector<224x224xf32>
    %c0_8 = arith.constant 0 : index
    %c0_9 = arith.constant 0 : index
    %13 = vector.load %arg5[%c0_8, %c0_9] : memref<1x224xf32, #tpu.memory_space<vmem>>, vector<1x224xf32>
    %cst_10 = arith.constant dense<0.000000e+00> : vector<16x224xf32>
    %14 = tpu.matmul %11, %12, %cst_10 {dimension_numbers = #tpu.dot_dimension_numbers<[1], [0], [0], [1], [0, 0, 1, 1], [], []>} : vector<16x224xf32>, vector<224x224xf32>, vector<16x224xf32> -> vector<16x224xf32>
    %15 = vector.broadcast %13 : vector<1x224xf32> to vector<16x224xf32>
    %16 = arith.addf %14, %15 : vector<16x224xf32>
    %17 = arith.negf %16 : vector<16x224xf32>
    %18 = math.exp %17 : vector<16x224xf32>
    %cst_11 = arith.constant 1.000000e+00 : f32
    %19 = vector.broadcast %cst_11 : f32 to vector<16x224xf32>
    %20 = arith.addf %19, %18 : vector<16x224xf32>
    %21 = arith.divf %19, %20 : vector<16x224xf32>
    %22 = arith.mulf %16, %21 : vector<16x224xf32>
    %c0_12 = arith.constant 0 : index
    %c0_13 = arith.constant 0 : index
    %23 = vector.load %arg6[%c0_12, %c0_13] : memref<224x128xf32, #tpu.memory_space<vmem>>, vector<224x128xf32>
    %c0_14 = arith.constant 0 : index
    %c0_15 = arith.constant 0 : index
    %24 = vector.load %arg7[%c0_14, %c0_15] : memref<1x128xf32, #tpu.memory_space<vmem>>, vector<1x128xf32>
    %c0_16 = arith.constant 0 : index
    %c0_17 = arith.constant 0 : index
    %25 = vector.load %arg8[%c0_16, %c0_17] : memref<16x128xf32, #tpu.memory_space<vmem>>, vector<16x128xf32>
    %c0_18 = arith.constant 0 : index
    %c0_19 = arith.constant 0 : index
    %26 = vector.load %arg9[%c0_18, %c0_19] : memref<1x128xf32, #tpu.memory_space<vmem>>, vector<1x128xf32>
    %c0_20 = arith.constant 0 : index
    %c0_21 = arith.constant 0 : index
    %27 = vector.load %arg10[%c0_20, %c0_21] : memref<1x128xf32, #tpu.memory_space<vmem>>, vector<1x128xf32>
    %cst_22 = arith.constant dense<0.000000e+00> : vector<16x128xf32>
    %28 = tpu.matmul %22, %23, %cst_22 {dimension_numbers = #tpu.dot_dimension_numbers<[1], [0], [0], [1], [0, 0, 1, 1], [], []>} : vector<16x224xf32>, vector<224x128xf32>, vector<16x128xf32> -> vector<16x128xf32>
    %29 = vector.broadcast %24 : vector<1x128xf32> to vector<16x128xf32>
    %30 = arith.addf %28, %29 : vector<16x128xf32>
    %cst_23 = arith.constant dense<0.000000e+00> : vector<16x128xf32>
    %31 = tpu.matmul %0, %25, %cst_23 {dimension_numbers = #tpu.dot_dimension_numbers<[1], [0], [0], [1], [0, 0, 1, 1], [], []>} : vector<16x16xf32>, vector<16x128xf32>, vector<16x128xf32> -> vector<16x128xf32>
    %32 = arith.addf %30, %31 : vector<16x128xf32>
    %33 = vector.broadcast %27 : vector<1x128xf32> to vector<16x128xf32>
    %34 = arith.subf %33, %30 : vector<16x128xf32>
    %cst_24 = arith.constant 0.000000e+00 : f32
    %35 = vector.broadcast %cst_24 : f32 to vector<16x128xf32>
    %36 = arith.maximumf %34, %35 : vector<16x128xf32>
    %37 = vector.broadcast %cst_24 : f32 to vector<16x128xf32>
    %38 = arith.subf %34, %37 : vector<16x128xf32>
    %39 = arith.cmpf one, %38, %38 : vector<16x128xf32>
    %40 = vector.broadcast %cst_24 : f32 to vector<16x128xf32>
    %41 = arith.addf %34, %40 : vector<16x128xf32>
    %42 = math.absf %38 : vector<16x128xf32>
    %cst_25 = arith.constant 0.000000e+00 : f32
    %43 = vector.broadcast %cst_25 : f32 to vector<16x128xf32>
    %44 = arith.subf %43, %42 : vector<16x128xf32>
    %45 = math.exp %44 : vector<16x128xf32>
    %46 = math.log1p %45 : vector<16x128xf32>
    %47 = arith.addf %36, %46 : vector<16x128xf32>
    %48 = arith.select %39, %41, %47 : vector<16x128xi1>, vector<16x128xf32>
    %49 = vector.broadcast %27 : vector<1x128xf32> to vector<16x128xf32>
    %50 = arith.subf %49, %48 : vector<16x128xf32>
    %51 = vector.broadcast %26 : vector<1x128xf32> to vector<16x128xf32>
    %52 = arith.subf %50, %51 : vector<16x128xf32>
    %cst_26 = arith.constant 0.000000e+00 : f32
    %53 = vector.broadcast %cst_26 : f32 to vector<16x128xf32>
    %54 = arith.maximumf %52, %53 : vector<16x128xf32>
    %55 = vector.broadcast %cst_26 : f32 to vector<16x128xf32>
    %56 = arith.subf %52, %55 : vector<16x128xf32>
    %57 = arith.cmpf one, %56, %56 : vector<16x128xf32>
    %58 = vector.broadcast %cst_26 : f32 to vector<16x128xf32>
    %59 = arith.addf %52, %58 : vector<16x128xf32>
    %60 = math.absf %56 : vector<16x128xf32>
    %cst_27 = arith.constant 0.000000e+00 : f32
    %61 = vector.broadcast %cst_27 : f32 to vector<16x128xf32>
    %62 = arith.subf %61, %60 : vector<16x128xf32>
    %63 = math.exp %62 : vector<16x128xf32>
    %64 = math.log1p %63 : vector<16x128xf32>
    %65 = arith.addf %54, %64 : vector<16x128xf32>
    %66 = arith.select %57, %59, %65 : vector<16x128xi1>, vector<16x128xf32>
    %67 = vector.broadcast %26 : vector<1x128xf32> to vector<16x128xf32>
    %68 = arith.addf %67, %66 : vector<16x128xf32>
    %69 = math.exp %68 : vector<16x128xf32>
    %70 = tpu.iota {dimensions = array<i32: 1>} : vector<16x128xi32>
    %c18_i32 = arith.constant 18 : i32
    %c0_i32 = arith.constant 0 : i32
    %71 = arith.cmpi eq, %c18_i32, %c0_i32 : i32
    %c1_i32 = arith.constant 1 : i32
    %72 = arith.select %71, %c1_i32, %c18_i32 : i32
    %73 = vector.broadcast %72 : i32 to vector<16x128xi32>
    %74 = arith.remsi %70, %73 : vector<16x128xi32>
    %c0_i32_28 = arith.constant 0 : i32
    %75 = vector.broadcast %c0_i32_28 : i32 to vector<16x128xi32>
    %76 = arith.cmpi ne, %74, %75 : vector<16x128xi32>
    %c0_i32_29 = arith.constant 0 : i32
    %77 = vector.broadcast %c0_i32_29 : i32 to vector<16x128xi32>
    %78 = arith.cmpi slt, %74, %77 : vector<16x128xi32>
    %c0_i32_30 = arith.constant 0 : i32
    %79 = arith.cmpi slt, %72, %c0_i32_30 : i32
    %80 = vector.broadcast %79 : i1 to vector<16x128xi1>
    %81 = vector.broadcast %80 : vector<16x128xi1> to vector<16x128xi1>
    %82 = arith.xori %78, %81 : vector<16x128xi1>
    %83 = arith.andi %82, %76 : vector<16x128xi1>
    %84 = vector.broadcast %72 : i32 to vector<16x128xi32>
    %85 = arith.addi %74, %84 : vector<16x128xi32>
    %86 = arith.select %83, %85, %74 : vector<16x128xi1>, vector<16x128xi32>
    %c9_i32 = arith.constant 9 : i32
    %87 = vector.broadcast %c9_i32 : i32 to vector<16x128xi32>
    %88 = arith.cmpi slt, %86, %87 : vector<16x128xi32>
    %89 = arith.select %88, %32, %69 : vector<16x128xi1>, vector<16x128xf32>
    %c0_31 = arith.constant 0 : index
    %c0_32 = arith.constant 0 : index
    %90 = vector.load %arg11[%c0_31, %c0_32] : memref<16x128xf32, #tpu.memory_space<vmem>>, vector<16x128xf32>
    tpu.vector_store %arg11[%c0_31, %c0_32], %89 {strides = array<i32>} : memref<16x128xf32, #tpu.memory_space<vmem>>, vector<16x128xf32>,
    return
  }
  func.func @transform_0(%arg0: i32) -> (i32, i32) {
    %c0_i32 = arith.constant 0 : i32
    %c0_i32_0 = arith.constant 0 : i32
    return %arg0, %c0_i32 : i32, i32
  }
  func.func @transform_1(%arg0: i32) -> (i32, i32) {
    %c0_i32 = arith.constant 0 : i32
    %c0_i32_0 = arith.constant 0 : i32
    %c0_i32_1 = arith.constant 0 : i32
    return %c0_i32, %c0_i32_0 : i32, i32
  }
  func.func @transform_2(%arg0: i32) -> (i32, i32) {
    %c0_i32 = arith.constant 0 : i32
    %c0_i32_0 = arith.constant 0 : i32
    %c0_i32_1 = arith.constant 0 : i32
    return %c0_i32, %c0_i32_0 : i32, i32
  }
  func.func @transform_3(%arg0: i32) -> (i32, i32) {
    %c0_i32 = arith.constant 0 : i32
    %c0_i32_0 = arith.constant 0 : i32
    %c0_i32_1 = arith.constant 0 : i32
    return %c0_i32, %c0_i32_0 : i32, i32
  }
  func.func @transform_4(%arg0: i32) -> (i32, i32) {
    %c0_i32 = arith.constant 0 : i32
    %c0_i32_0 = arith.constant 0 : i32
    %c0_i32_1 = arith.constant 0 : i32
    return %c0_i32, %c0_i32_0 : i32, i32
  }
  func.func @transform_5(%arg0: i32) -> (i32, i32) {
    %c0_i32 = arith.constant 0 : i32
    %c0_i32_0 = arith.constant 0 : i32
    %c0_i32_1 = arith.constant 0 : i32
    return %c0_i32, %c0_i32_0 : i32, i32
  }
  func.func @transform_6(%arg0: i32) -> (i32, i32) {
    %c0_i32 = arith.constant 0 : i32
    %c0_i32_0 = arith.constant 0 : i32
    %c0_i32_1 = arith.constant 0 : i32
    return %c0_i32, %c0_i32_0 : i32, i32
  }
  func.func @transform_7(%arg0: i32) -> (i32, i32) {
    %c0_i32 = arith.constant 0 : i32
    %c0_i32_0 = arith.constant 0 : i32
    %c0_i32_1 = arith.constant 0 : i32
    return %c0_i32, %c0_i32_0 : i32, i32
  }
  func.func @transform_8(%arg0: i32) -> (i32, i32) {
    %c0_i32 = arith.constant 0 : i32
    %c0_i32_0 = arith.constant 0 : i32
    %c0_i32_1 = arith.constant 0 : i32
    return %c0_i32, %c0_i32_0 : i32, i32
  }
  func.func @transform_9(%arg0: i32) -> (i32, i32) {
    %c0_i32 = arith.constant 0 : i32
    %c0_i32_0 = arith.constant 0 : i32
    %c0_i32_1 = arith.constant 0 : i32
    return %c0_i32, %c0_i32_0 : i32, i32
  }
  func.func @transform_10(%arg0: i32) -> (i32, i32) {
    %c0_i32 = arith.constant 0 : i32
    %c0_i32_0 = arith.constant 0 : i32
    return %arg0, %c0_i32 : i32, i32
  }
}

</mosaic_0001>

<bundles_post_ra>
// kernel: tpu_custom_call.1
= control target key start
LH: loop header
LB: loop body
LE: loop exit
PB: predicated region body
PF: predicated region fallthrough
CT: control target
= control target key end

     0   :  { %15 = vsyncpa [#allocation3], 0  ;;  %s1161_s0 = inlined_call_operand.hbm [shape: f32[16,16], index: 0, kind: input, shape index: {}]   ;;  %s1162_s1 = inlined_call_operand.hbm [shape: f32[16,224], index: 1, kind: input, shape index: {}]   ;;  %s1163_s2 = inlined_call_operand.vmem [shape: f32[1,224], index: 2, kind: input, shape index: {}]   ;;  %s1164_s3 = inlined_call_operand.hbm [shape: f32[224,224], index: 3, kind: input, shape index: {}]   ;;  %s1165_s4 = inlined_call_operand.vmem [shape: f32[1,224], index: 4, kind: input, shape index: {}]   ;;  %s1166_s5 = inlined_call_operand.hbm [shape: f32[224,128], index: 5, kind: input, shape index: {}]   ;;  %s1167_s6 = inlined_call_operand.vmem [shape: f32[1,128], index: 6, kind: input, shape index: {}]   ;;  %s1168_s7 = inlined_call_operand.hbm [shape: f32[16,128], index: 7, kind: input, shape index: {}]   ;;  %s1169_s8 = inlined_call_operand.vmem [shape: f32[1,128], index: 8, kind: input, shape index: {}]   ;;  %s1170_s9 = inlined_call_operand.vmem [shape: f32[1,128], index: 9, kind: input, shape index: {}]   ;;  %s1171_s10 = inlined_call_operand.hbm [shape: f32[16,128], index: 10, kind: output, shape index: {}]  }
   0x1   :  { %16 = vsyncpa [#allocation6], 0 }
   0x2   :  { %17 = vsyncpa [#allocation9], 0 }
   0x3   :  { %18 = vsyncpa [#allocation4], 0  ;;  %s972_s13 = smov [#allocation5]  }
   0x4   :  { %s36_s14 = sshll.u32 %s972_s13, 4  ;;  %s37_s14 = int_to_ptr.vmem [resolvable:$true] %s36_s14 }
   0x5   :  { %s852_s15 = scalar_lea.vmem %s37_s14, 512  ;;  %p857_p1 = scmp.lt.s32.totalorder %s37_s14, %s37_s14 }
   0x6   :  { %p853_p0 = scmp.ne.s32.totalorder %s37_s14, %s852_s15  ;;  %p858_p2 = scmp.lt.s32.totalorder %s852_s15, %s852_s15 }
   0x8   :  { %p859_p3 = por %p858_p2, %p857_p1 }
   0xa   :  { %p860_p4 = pnand %p859_p3, %p853_p0 }
   0xc   :  { %863 = shalt.err (!%p860_p4)
}
   0xd   :  { %s973_s16 = smov 256   ;;  %s974_s17 = smov 16  }
   0xe   :  { %42 = dma.hbm_to_vmem [thread:$0]  %s1162_s1, 512, %s37_s14, [#allocation6], %s973_s16, %s973_s16, %s974_s17  }
   0xf   :  { %s975_s20 = smov [#allocation8]   ;;  %s976_s22 = smov [#allocation2]  }
  0x10   :  { %s64_s21 = sshll.u32 %s975_s20, 4  ;;  %s24_s23 = sshll.u32 %s976_s22, 4  ;;  %s65_s21 = int_to_ptr.vmem [resolvable:$true] %s64_s21  ;;  %s25_s23 = int_to_ptr.vmem [resolvable:$true] %s24_s23 }
  0x11   :  { %s872_s24 = scalar_lea.vmem %s65_s21, 3584  ;;  %p877_p6 = scmp.lt.s32.totalorder %s65_s21, %s65_s21 }
  0x12   :  { %p873_p5 = scmp.ne.s32.totalorder %s65_s21, %s872_s24  ;;  %p878_p7 = scmp.lt.s32.totalorder %s872_s24, %s872_s24 }
  0x14   :  { %p879_p8 = por %p878_p7, %p877_p6 }
  0x16   :  { %p880_p9 = pnand %p879_p8, %p873_p5 }
  0x18   :  { %883 = shalt.err (!%p880_p9)
}
  0x19   :  { %s977_s25 = smov 128   ;;  %s978_s26 = smov 8  }
  0x1a   :  { %70 = dma.hbm_to_vmem [thread:$0]  %s1166_s5, 3584, %s65_s21, [#allocation9], %s977_s25, %s977_s25, %s978_s26  }
  0x1b   :  { %s892_s1 = scalar_lea.vmem %s25_s23, 256  ;;  %p897_p11 = scmp.lt.s32.totalorder %s25_s23, %s25_s23 }
  0x1c   :  { %p893_p10 = scmp.ne.s32.totalorder %s25_s23, %s892_s1  ;;  %p898_p12 = scmp.lt.s32.totalorder %s892_s1, %s892_s1 }
  0x1e   :  { %p899_p13 = por %p898_p12, %p897_p11 }
  0x20   :  { %p900_p0 = pnand %p899_p13, %p893_p10 }
  0x22   :  { %903 = shalt.err (!%p900_p0)
}
  0x23   :  { %30 = dma.hbm_to_vmem [thread:$0]  %s1161_s0, 256, %s25_s23, [#allocation3], %s977_s25, %s977_s25, %s978_s26  }
  0x24   :  { %s979_s11 = smov [#allocation7]   ;;  %s980_s13 = smov [#allocation10]  }
  0x25   :  { %s50_s12 = sshll.u32 %s979_s11, 4  ;;  %s78_s5 = sshll.u32 %s980_s13, 4  ;;  %s51_s12 = int_to_ptr.vmem [resolvable:$true] %s50_s12  ;;  %s79_s5 = int_to_ptr.vmem [resolvable:$true] %s78_s5 }
  0x26   :  { %s912_s14 = scalar_lea.vmem %s51_s12, 7168  ;;  %p917_p2 = scmp.lt.s32.totalorder %s51_s12, %s51_s12 }
  0x27   :  { %p913_p1 = scmp.ne.s32.totalorder %s51_s12, %s912_s14  ;;  %p918_p3 = scmp.lt.s32.totalorder %s912_s14, %s912_s14 }
  0x29   :  { %p919_p4 = por %p918_p3, %p917_p2 }
  0x2b   :  { %p920_p5 = pnand %p919_p4, %p913_p1 }
  0x2d   :  { %923 = shalt.err (!%p920_p5)
}
  0x2e   :  { %56 = dma.hbm_to_vmem [thread:$0]  %s1164_s3, 7168, %s51_s12, [#allocation6], %s973_s16, %s973_s16, %s974_s17  }
  0x2f   :  { %s932_s0 = scalar_lea.vmem %s79_s5, 256  ;;  %p937_p7 = scmp.lt.s32.totalorder %s79_s5, %s79_s5 }
  0x30   :  { %p933_p6 = scmp.ne.s32.totalorder %s79_s5, %s932_s0  ;;  %p938_p8 = scmp.lt.s32.totalorder %s932_s0, %s932_s0 }
  0x32   :  { %p939_p9 = por %p938_p8, %p937_p7 }
  0x34   :  { %p940_p10 = pnand %p939_p9, %p933_p6 }
  0x36   :  { %943 = shalt.err (!%p940_p10)
}
  0x37   :  { %84 = dma.hbm_to_vmem [thread:$0]  %s1168_s7, 256, %s79_s5, [#allocation9], %s977_s25, %s977_s25, %s978_s26  }
  0x38   :  { %964 = dma.done.wait [#allocation3], 256  }
  0x39   :  { %965 = vsyncadd [#allocation3], 4294967040 }
  0x3a   :  { %966 = dma.done.wait [#allocation6], 7680  }
  0x3b   :  { %967 = vsyncadd [#allocation6], 4294959616 }
  0x3c   :  { %968 = dma.done.wait [#allocation9], 3840  }
  0x3d   :  { %969 = vsyncadd [#allocation9], 4294963456  ;;  %v981_v0 = vmov 0.0   ;;  %v109_v1 = vld [vmem:[#allocation5 + $0x18] sm:$0xff]  ;;  %v108_v2 = vld [vmem:[#allocation5 + $0x10] sm:$0xff]  ;;  %vm122_vm0 = vcmask 130048  }
  0x3e   :  { %193 = vmatprep.mubr.f32.mxu0 %v981_v0  ;;  %v107_v3 = vld [vmem:[#allocation5 + $0x8] sm:$0xff]  ;;  %157 = vmatprep.subr.mxu0 %v109_v1  ;;  %v106_v4 = vld [vmem:[#allocation5] sm:$0xff]  ;;  %v1069_v5 = vld [vmem:[#allocation2] sm:$0xff]  ;;  %vm302_vm1 = vcmask 785408  }
  0x3f   :  { %158 = vmatpush1.msra.mxu0 %v108_v2  ;;  %v265_v6 = vld [vmem:[#allocation7 + $0xf8] sm:$0xff]  ;;  %v264_v7 = vld [vmem:[#allocation7 + $0xf0] sm:$0xff]  ;;  %v263_v8 = vld [vmem:[#allocation7 + $0xe8] sm:$0xff] }
  0x40   :  { %159 = vmatprep.subr.mxu0 %v107_v3  ;;  %309 = vmatprep.subr.mxu1 %v265_v6  ;;  %v262_v9 = vld [vmem:[#allocation7 + $0xe0] sm:$0xff]  ;;  %v261_v10 = vld [vmem:[#allocation7 + $0xd8] sm:$0xff]  ;;  %v260_v11 = vld [vmem:[#allocation7 + $0xd0] sm:$0xff] }
  0x41   :  { %160 = vmatpush1.msra.mxu0 %v106_v4  ;;  %310 = vmatpush1.msra.mxu1 %v264_v7  ;;  %v1074_v12 = vld [vmem:[#allocation2 + $0x8] sm:$0xff]  ;;  %v259_v13 = vld [vmem:[#allocation7 + $0xc8] sm:$0xff]  ;;  %v258_v14 = vld [vmem:[#allocation7 + $0xc0] sm:$0xff] }
  0x42   :  { %749 = vmatmul.mubr.msk.f32.vlgmr.msra.gmra.mxu0 %vm122_vm0, %v1069_v5  ;;  %311 = vmatprep.subr.mxu1 %v263_v8  ;;  %v257_v15 = vld [vmem:[#allocation7 + $0xb8] sm:$0xff]  ;;  %v256_v16 = vld [vmem:[#allocation7 + $0xb0] sm:$0xff]  ;;  %v255_v17 = vld [vmem:[#allocation7 + $0xa8] sm:$0xff] }
  0x43   :  { %199 = vmatprep.mubr.f32.mxu0 %v981_v0  ;;  %312 = vmatpush1.msra.mxu1 %v262_v9  ;;  %v254_v18 = vld [vmem:[#allocation7 + $0xa0] sm:$0xff]  ;;  %v253_v19 = vld [vmem:[#allocation7 + $0x98] sm:$0xff]  ;;  %v252_v20 = vld [vmem:[#allocation7 + $0x90] sm:$0xff]  ;;  %v112_v9 = vlaneseq }
  0x44   :  { %313 = vmatprep.subr.mxu1 %v261_v10  ;;  %459 = vmatprep.subr.mxu0 %v981_v0  ;;  %v251_v21 = vld [vmem:[#allocation7 + $0x88] sm:$0xff]  ;;  %v250_v22 = vld [vmem:[#allocation7 + $0x80] sm:$0xff]  ;;  %v249_v23 = vld [vmem:[#allocation7 + $0x78] sm:$0xff] }
  0x45   :  { %314 = vmatpush1.msra.mxu1 %v260_v11  ;;  %v248_v24 = vld [vmem:[#allocation7 + $0x70] sm:$0xff]  ;;  %v247_v25 = vld [vmem:[#allocation7 + $0x68] sm:$0xff]  ;;  %v246_v26 = vld [vmem:[#allocation7 + $0x60] sm:$0xff]  ;;  %v1088_v10 = vshrl.u32 %v112_v9, 7 }
  0x46   :  { %750 = vmatmul.mubr.msk.f32.gmra.mxu0 %vm122_vm0, %v1074_v12  ;;  %315 = vmatprep.subr.mxu1 %v259_v13  ;;  %v245_v27 = vld [vmem:[#allocation7 + $0x58] sm:$0xff]  ;;  %v244_v28 = vld [vmem:[#allocation7 + $0x50] sm:$0xff]  ;;  %v243_v29 = vld [vmem:[#allocation7 + $0x48] sm:$0xff] }
  0x47   :  { %316 = vmatpush1.msra.mxu1 %v258_v14  ;;  %v242_v30 = vld [vmem:[#allocation7 + $0x40] sm:$0xff]  ;;  %v241_v31 = vld [vmem:[#allocation7 + $0x38] sm:$0xff]  ;;  %v240_v32 = vld [vmem:[#allocation7 + $0x30] sm:$0xff]  ;;  %v114_v11 = vsub.s32 0, %v1088_v10  ;;  %v118_v14 = vsub.s32 1, %v1088_v10 }
  0x48   :  { %317 = vmatprep.subr.mxu1 %v257_v15  ;;  %v239_v33 = vld [vmem:[#allocation7 + $0x28] sm:$0xff]  ;;  %v238_v34 = vld [vmem:[#allocation7 + $0x20] sm:$0xff]  ;;  %v237_v35 = vld [vmem:[#allocation7 + $0x18] sm:$0xff] }
  0x49   :  { %318 = vmatpush1.msra.mxu1 %v256_v16  ;;  %v236_v36 = vld [vmem:[#allocation7 + $0x10] sm:$0xff]  ;;  %v235_v37 = vld [vmem:[#allocation7 + $0x8] sm:$0xff]  ;;  %v234_v38 = vld [vmem:[#allocation7] sm:$0xff] }
  0x4a   :  { %319 = vmatprep.subr.mxu1 %v255_v17  ;;  %v289_v39 = vld [vmem:[#allocation7 + $0x1b8] sm:$0xff]  ;;  %v288_v40 = vld [vmem:[#allocation7 + $0x1b0] sm:$0xff]  ;;  %v287_v41 = vld [vmem:[#allocation7 + $0x1a8] sm:$0xff] }
  0x4b   :  { %320 = vmatpush1.msra.mxu1 %v254_v18  ;;  %v286_v42 = vld [vmem:[#allocation7 + $0x1a0] sm:$0xff]  ;;  %v285_v43 = vld [vmem:[#allocation7 + $0x198] sm:$0xff]  ;;  %v284_v44 = vld [vmem:[#allocation7 + $0x190] sm:$0xff] }
  0x4c   :  { %321 = vmatprep.subr.mxu1 %v253_v19  ;;  %v283_v45 = vld [vmem:[#allocation7 + $0x188] sm:$0xff]  ;;  %v282_v46 = vld [vmem:[#allocation7 + $0x180] sm:$0xff]  ;;  %v281_v47 = vld [vmem:[#allocation7 + $0x178] sm:$0xff] }
  0x4d   :  { %322 = vmatpush1.msra.mxu1 %v252_v20  ;;  %v280_v48 = vld [vmem:[#allocation7 + $0x170] sm:$0xff]  ;;  %v279_v49 = vld [vmem:[#allocation7 + $0x168] sm:$0xff]  ;;  %v278_v50 = vld [vmem:[#allocation7 + $0x160] sm:$0xff] }
  0x4e   :  { %323 = vmatprep.subr.mxu1 %v251_v21  ;;  %v277_v51 = vld [vmem:[#allocation7 + $0x158] sm:$0xff]  ;;  %v276_v52 = vld [vmem:[#allocation7 + $0x150] sm:$0xff]  ;;  %v275_v53 = vld [vmem:[#allocation7 + $0x148] sm:$0xff] }
  0x4f   :  { %324 = vmatpush1.msra.mxu1 %v250_v22  ;;  %v274_v54 = vld [vmem:[#allocation7 + $0x140] sm:$0xff]  ;;  %v273_v55 = vld [vmem:[#allocation7 + $0x138] sm:$0xff]  ;;  %v272_v56 = vld [vmem:[#allocation7 + $0x130] sm:$0xff] }
  0x50   :  { %325 = vmatprep.subr.mxu1 %v249_v23  ;;  %v271_v57 = vld [vmem:[#allocation7 + $0x128] sm:$0xff]  ;;  %v270_v58 = vld [vmem:[#allocation7 + $0x120] sm:$0xff]  ;;  %v269_v59 = vld [vmem:[#allocation7 + $0x118] sm:$0xff] }
  0x51   :  { %326 = vmatpush1.msra.mxu1 %v248_v24  ;;  %v268_v60 = vld [vmem:[#allocation7 + $0x110] sm:$0xff]  ;;  %v267_v61 = vld [vmem:[#allocation7 + $0x108] sm:$0xff]  ;;  %v266_v62 = vld [vmem:[#allocation7 + $0x100] sm:$0xff] }
  0x52   :  { %327 = vmatprep.subr.mxu1 %v247_v25  ;;  %v429_v63 = vld [vmem:[#allocation8 + $0x78] sm:$0xff]  ;;  %v428_v1 = vld [vmem:[#allocation8 + $0x70] sm:$0xff]  ;;  %v427_v2 = vld [vmem:[#allocation8 + $0x68] sm:$0xff] }
  0x53   :  { %328 = vmatpush1.msra.mxu1 %v246_v26  ;;  %460 = vmatpush1.msra.mxu0 %v429_v63  ;;  %v426_v3 = vld [vmem:[#allocation8 + $0x60] sm:$0xff]  ;;  %v425_v4 = vld [vmem:[#allocation8 + $0x58] sm:$0xff]  ;;  %v424_v6 = vld [vmem:[#allocation8 + $0x50] sm:$0xff] }
  0x54   :  { %329 = vmatprep.subr.mxu1 %v245_v27  ;;  %461 = vmatprep.subr.mxu0 %v981_v0  ;;  %v423_v7 = vld [vmem:[#allocation8 + $0x48] sm:$0xff]  ;;  %v422_v8 = vld [vmem:[#allocation8 + $0x40] sm:$0xff]  ;;  %v110_v13 = vld [vmem:[%s1163_s2] sm:$0x3] }
  0x55   :  { %330 = vmatpush1.msra.mxu1 %v244_v28  ;;  %462 = vmatpush1.msra.mxu0 %v428_v1  ;;  %v115_v15 = vrot.slane %v110_v13, %v114_v11  ;;  %v119_v16 = vrot.slane %v110_v13, %v118_v14  ;;  %v431_v63 = vld [vmem:[#allocation8 + $0x88] sm:$0xff]  ;;  %v443_v1 = vld [vmem:[#allocation10] sm:$0xff] }
  0x56   :  { %331 = vmatprep.subr.mxu1 %v243_v29  ;;  %463 = vmatprep.subr.mxu0 %v981_v0 }
  0x57   :  { %332 = vmatpush1.msra.mxu1 %v242_v30  ;;  %464 = vmatpush1.msra.mxu0 %v427_v2  ;;  %v430_v2 = vld [vmem:[#allocation8 + $0x80] sm:$0xff] }
  0x58   :  { %333 = vmatprep.subr.mxu1 %v241_v31  ;;  %465 = vmatprep.subr.mxu0 %v981_v0 }
  0x59   :  { %334 = vmatpush1.msra.mxu1 %v240_v32  ;;  %466 = vmatpush1.msra.mxu0 %v426_v3  ;;  %v290_v3 = vld [vmem:[%s1165_s4] sm:$0x3] }
  0x5a   :  { %335 = vmatprep.subr.mxu1 %v239_v33  ;;  %467 = vmatprep.subr.mxu0 %v981_v0 }
  0x5b   :  { %336 = vmatpush1.msra.mxu1 %v238_v34  ;;  %468 = vmatpush1.msra.mxu0 %v425_v4  ;;  %v295_v4 = vrot.slane %v290_v3, %v114_v11 }
  0x5c   :  { %337 = vmatprep.subr.mxu1 %v237_v35  ;;  %469 = vmatprep.subr.mxu0 %v981_v0 }
  0x5d   :  { %338 = vmatpush1.msra.mxu1 %v236_v36  ;;  %470 = vmatpush1.msra.mxu0 %v424_v6  ;;  %v299_v6 = vrot.slane %v290_v3, %v118_v14 }
  0x5e   :  { %339 = vmatprep.subr.mxu1 %v235_v37  ;;  %471 = vmatprep.subr.mxu0 %v981_v0 }
  0x5f   :  { %340 = vmatpush1.msra.mxu1 %v234_v38  ;;  %472 = vmatpush1.msra.mxu0 %v423_v7 }
  0x60   :  { %349 = vmatprep.subr.mxu1 %v289_v39  ;;  %473 = vmatprep.subr.mxu0 %v981_v0 }
  0x61   :  { %350 = vmatpush2.msra.mxu1 %v288_v40  ;;  %474 = vmatpush1.msra.mxu0 %v422_v8 }
  0x62   :  { %351 = vmatprep.subr.mxu1 %v287_v41  ;;  %475 = vmatprep.subr.mxu0 %v981_v0 }
  0x63   :  { %352 = vmatpush2.msra.mxu1 %v286_v42 }
  0x64   :  { %353 = vmatprep.subr.mxu1 %v285_v43 }
  0x65   :  { %354 = vmatpush2.msra.mxu1 %v284_v44 }
  0x66   :  { %355 = vmatprep.subr.mxu1 %v283_v45  ;;  %v421_v45 = vld [vmem:[#allocation8 + $0x38] sm:$0xff] }
  0x67   :  { %356 = vmatpush2.msra.mxu1 %v282_v46  ;;  %476 = vmatpush1.msra.mxu0 %v421_v45  ;;  %v420_v46 = vld [vmem:[#allocation8 + $0x30] sm:$0xff] }
  0x68   :  { %357 = vmatprep.subr.mxu1 %v281_v47  ;;  %477 = vmatprep.subr.mxu0 %v981_v0  ;;  %v419_v47 = vld [vmem:[#allocation8 + $0x28] sm:$0xff] }
  0x69   :  { %358 = vmatpush2.msra.mxu1 %v280_v48  ;;  %478 = vmatpush1.msra.mxu0 %v420_v46  ;;  %v418_v48 = vld [vmem:[#allocation8 + $0x20] sm:$0xff] }
  0x6a   :  { %359 = vmatprep.subr.mxu1 %v279_v49  ;;  %479 = vmatprep.subr.mxu0 %v981_v0  ;;  %v417_v49 = vld [vmem:[#allocation8 + $0x18] sm:$0xff] }
  0x6b   :  { %360 = vmatpush2.msra.mxu1 %v278_v50  ;;  %480 = vmatpush1.msra.mxu0 %v419_v47  ;;  %v415_v50 = vld [vmem:[#allocation8 + $0x8] sm:$0xff] }
  0x6c   :  { %361 = vmatprep.subr.mxu1 %v277_v51  ;;  %481 = vmatprep.subr.mxu0 %v981_v0  ;;  %v414_v51 = vld [vmem:[#allocation8] sm:$0xff] }
  0x6d   :  { %362 = vmatpush2.msra.mxu1 %v276_v52  ;;  %482 = vmatpush1.msra.mxu0 %v418_v48  ;;  %v441_v52 = vld [vmem:[#allocation8 + $0xd8] sm:$0xff] }
  0x6e   :  { %363 = vmatprep.subr.mxu1 %v275_v53  ;;  %483 = vmatprep.subr.mxu0 %v981_v0  ;;  %v440_v53 = vld [vmem:[#allocation8 + $0xd0] sm:$0xff] }
  0x6f   :  { %364 = vmatpush2.msra.mxu1 %v274_v54  ;;  %484 = vmatpush1.msra.mxu0 %v417_v49  ;;  %v439_v54 = vld [vmem:[#allocation8 + $0xc8] sm:$0xff] }
  0x70   :  { %365 = vmatprep.subr.mxu1 %v273_v55  ;;  %485 = vmatprep.subr.mxu0 %v981_v0  ;;  %v438_v55 = vld [vmem:[#allocation8 + $0xc0] sm:$0xff] }
  0x71   :  { %366 = vmatpush2.msra.mxu1 %v272_v56  ;;  %v437_v56 = vld [vmem:[#allocation8 + $0xb8] sm:$0xff] }
  0x72   :  { %367 = vmatprep.subr.mxu1 %v271_v57  ;;  %v436_v57 = vld [vmem:[#allocation8 + $0xb0] sm:$0xff] }
  0x73   :  { %368 = vmatpush2.msra.mxu1 %v270_v58  ;;  %v435_v58 = vld [vmem:[#allocation8 + $0xa8] sm:$0xff] }
  0x74   :  { %369 = vmatprep.subr.mxu1 %v269_v59  ;;  %v434_v59 = vld [vmem:[#allocation8 + $0xa0] sm:$0xff] }
  0x75   :  { %370 = vmatpush2.msra.mxu1 %v268_v60  ;;  %v433_v60 = vld [vmem:[#allocation8 + $0x98] sm:$0xff] }
  0x76   :  { %371 = vmatprep.subr.mxu1 %v267_v61  ;;  %v432_v61 = vld [vmem:[#allocation8 + $0x90] sm:$0xff] }
  0x77   :  { %372 = vmatpush2.msra.mxu1 %v266_v62  ;;  %v444_v62 = vld [vmem:[#allocation10 + $0x8] sm:$0xff] }
  0x78   :  { %772 = vmatprep.subr.mxu1 %v444_v62 }
 0x102   :  { %v195_v17 = vpop.f32.mrf.mxu0 }
 0x103   :  { %v196_v18 = vadd.f32 %v195_v17, %v115_v15 }
 0x104   :  { %v197_v19 = vpop.f32.mrf.mxu0 }
 0x105   :  { %v751_v20 = vmul.f32 -1.442695, %v196_v18  ;;  %v198_v21 = vadd.f32 %v197_v19, %v119_v16 }
 0x106   :  { %v201_v22 = vpop.f32.mrf.mxu0 }
 0x107   :  { %792 = vpow2.f32 %v751_v20  ;;  %v752_v23 = vmul.f32 -1.442695, %v198_v21  ;;  %v202_v24 = vadd.f32 %v201_v22, %v115_v15 }
 0x108   :  { %v203_v25 = vpop.f32.mrf.mxu0 }
 0x109   :  { %794 = vpow2.f32 %v752_v23  ;;  %v753_v26 = vmul.f32 -1.442695, %v202_v24  ;;  %v204_v27 = vadd.f32 %v203_v25, %v119_v16 }
 0x10b   :  { %796 = vpow2.f32 %v753_v26  ;;  %v754_v28 = vmul.f32 -1.442695, %v204_v27 }
 0x10d   :  { %798 = vpow2.f32 %v754_v28 }
 0x114   :  { %v793_v29 = vpop.eup %792 }
 0x115   :  { %v218_v30 = vadd.f32 1.0, %v793_v29 }
 0x116   :  { %v795_v31 = vpop.eup %794 }
 0x117   :  { %v219_v32 = vadd.f32 1.0, %v795_v31  ;;  %800 = vrcp.f32 %v218_v30 }
 0x118   :  { %v797_v33 = vpop.eup %796 }
 0x119   :  { %802 = vrcp.f32 %v219_v32  ;;  %v220_v34 = vadd.f32 1.0, %v797_v33 }
 0x11a   :  { %v799_v35 = vpop.eup %798 }
 0x11b   :  { %v221_v36 = vadd.f32 1.0, %v799_v35  ;;  %804 = vrcp.f32 %v220_v34  ;;  %v761_v35 = vld [vmem:[%s1167_s6] ss:$0 sm:$0xff] }
 0x11d   :  { %806 = vrcp.f32 %v221_v36  ;;  %v766_v36 = vld [vmem:[%s1170_s9] ss:$0 sm:$0xff] }
 0x124   :  { %v801_v37 = vpop.eup %800 }
 0x125   :  { %v230_v40 = vmul.f32 %v801_v37, %v196_v18 }
 0x126   :  { %v803_v38 = vpop.eup %802 }
 0x127   :  { %v231_v39 = vmul.f32 %v803_v38, %v198_v21 }
 0x128   :  { %v805_v41 = vpop.eup %804 }
 0x129   :  { %755 = vmatprep.mubr.msk.f32.mxu1 %vm302_vm1, %v231_v39  ;;  %v232_v44 = vmul.f32 %v805_v41, %v202_v24 }
 0x12a   :  { %v807_v42 = vpop.eup %806  ;;  %374 = vmatmul.mubr.f32.vlgmr.msra.gmra.mxu1 %v230_v40 }
 0x12b   :  { %v233_v43 = vmul.f32 %v807_v42, %v204_v27  ;;  %773 = vmatpush3.msra.mxu1 %v444_v62 }
 0x12c   :  { %774 = vmatprep.subr.mxu1 %v443_v1 }
 0x12d   :  { %756 = vmatprep.mubr.msk.f32.mxu1 %vm302_vm1, %v233_v43  ;;  %775 = vmatpush3.msra.mxu1 %v443_v1 }
 0x12e   :  { %380 = vmatmul.mubr.f32.gmra.mxu1 %v232_v44 }
 0x12f   :  { %776 = vmatprep.mubr.msk.f32.mxu1 %vm122_vm0, %v1069_v5  ;;  %v416_v5 = vld [vmem:[#allocation8 + $0x10] sm:$0xff] }
 0x130   :  { %486 = vmatpush1.msra.mxu0 %v416_v5 }
 0x131   :  { %487 = vmatprep.subr.mxu0 %v981_v0 }
 0x132   :  { %488 = vmatpush1.msra.mxu0 %v415_v50  ;;  %777 = vmatmul.mubr.msk.f32.vlgmr.msra.gmra.mxu1 %vm122_vm0, %v1074_v12 }
 0x133   :  { %489 = vmatprep.subr.mxu0 %v981_v0 }
 0x134   :  { %490 = vmatpush1.msra.mxu0 %v414_v51 }
 0x135   :  { %499 = vmatprep.subr.mxu0 %v981_v0 }
 0x136   :  { %500 = vmatpush2.msra.mxu0 %v441_v52 }
 0x137   :  { %501 = vmatprep.subr.mxu0 %v981_v0 }
 0x138   :  { %502 = vmatpush2.msra.mxu0 %v440_v53 }
 0x139   :  { %503 = vmatprep.subr.mxu0 %v981_v0 }
 0x13a   :  { %504 = vmatpush2.msra.mxu0 %v439_v54 }
 0x13b   :  { %505 = vmatprep.subr.mxu0 %v981_v0 }
 0x13c   :  { %506 = vmatpush2.msra.mxu0 %v438_v55 }
 0x13d   :  { %507 = vmatprep.subr.mxu0 %v981_v0 }
 0x13e   :  { %508 = vmatpush2.msra.mxu0 %v437_v56 }
 0x13f   :  { %509 = vmatprep.subr.mxu0 %v981_v0 }
 0x140   :  { %510 = vmatpush2.msra.mxu0 %v436_v57 }
 0x141   :  { %511 = vmatprep.subr.mxu0 %v981_v0 }
 0x142   :  { %512 = vmatpush2.msra.mxu0 %v435_v58 }
 0x143   :  { %513 = vmatprep.subr.mxu0 %v981_v0 }
 0x144   :  { %514 = vmatpush2.msra.mxu0 %v434_v59 }
 0x145   :  { %515 = vmatprep.subr.mxu0 %v981_v0 }
 0x146   :  { %516 = vmatpush2.msra.mxu0 %v433_v60 }
 0x147   :  { %517 = vmatprep.subr.mxu0 %v981_v0 }
 0x148   :  { %518 = vmatpush2.msra.mxu0 %v432_v61 }
 0x149   :  { %519 = vmatprep.subr.mxu0 %v981_v0 }
 0x14a   :  { %520 = vmatpush2.msra.mxu0 %v431_v63 }
 0x14b   :  { %521 = vmatprep.subr.mxu0 %v981_v0 }
 0x14c   :  { %522 = vmatpush2.msra.mxu0 %v430_v2 }
 0x1ea   :  { %v375_v7 = vpop.f32.mrf.mxu1 }
 0x1eb   :  { %v376_v8 = vadd.f32 %v375_v7, %v295_v4  ;;  %v767_v7 = vld [vmem:[%s1169_s8] ss:$0 sm:$0xff]  ;;  %s982_s8 = smov [#allocation11]  }
 0x1ec   :  { %v377_v0 = vpop.f32.mrf.mxu1  ;;  %s735_s23 = sshll.u32 %s982_s8, 4  ;;  %s736_s23 = int_to_ptr.vmem [resolvable:$true] %s735_s23 }
 0x1ed   :  { %v757_v13 = vmul.f32 -1.442695, %v376_v8  ;;  %v378_v15 = vadd.f32 %v377_v0, %v299_v6  ;;  %s944_s24 = scalar_lea.vmem %s736_s23, 256  ;;  %p949_p12 = scmp.lt.s32.totalorder %s736_s23, %s736_s23 }
 0x1ee   :  { %v381_v16 = vpop.f32.mrf.mxu1  ;;  %p945_p11 = scmp.ne.s32.totalorder %s736_s23, %s944_s24  ;;  %p950_p13 = scmp.lt.s32.totalorder %s944_s24, %s944_s24 }
 0x1ef   :  { %808 = vpow2.f32 %v757_v13  ;;  %v758_v17 = vmul.f32 -1.442695, %v378_v15  ;;  %v382_v18 = vadd.f32 %v381_v16, %v295_v4 }
 0x1f0   :  { %v383_v12 = vpop.f32.mrf.mxu1  ;;  %p951_p0 = por %p950_p13, %p949_p12 }
 0x1f1   :  { %810 = vpow2.f32 %v758_v17  ;;  %v759_v19 = vmul.f32 -1.442695, %v382_v18  ;;  %v384_v20 = vadd.f32 %v383_v12, %v299_v6 }
 0x1f2   :  { %p952_p1 = pnand %p951_p0, %p945_p11 }
 0x1f3   :  { %812 = vpow2.f32 %v759_v19  ;;  %v760_v21 = vmul.f32 -1.442695, %v384_v20 }
 0x1f5   :  { %814 = vpow2.f32 %v760_v21 }
 0x1fc   :  { %v809_v11 = vpop.eup %808 }
 0x1fd   :  { %v398_v22 = vadd.f32 1.0, %v809_v11 }
 0x1fe   :  { %v811_v10 = vpop.eup %810 }
 0x1ff   :  { %v399_v14 = vadd.f32 1.0, %v811_v10  ;;  %816 = vrcp.f32 %v398_v22 }
 0x200   :  { %v813_v23 = vpop.eup %812 }
 0x201   :  { %818 = vrcp.f32 %v399_v14  ;;  %v400_v24 = vadd.f32 1.0, %v813_v23 }
 0x202   :  { %v815_v25 = vpop.eup %814 }
 0x203   :  { %v401_v26 = vadd.f32 1.0, %v815_v25  ;;  %820 = vrcp.f32 %v400_v24 }
 0x205   :  { %822 = vrcp.f32 %v401_v26  ;;  %v708_v26 = vand.u32 127, %v112_v9 }
 0x20c   :  { %v817_v27 = vpop.eup %816 }
 0x20d   :  { %v410_v30 = vmul.f32 %v817_v27, %v376_v8 }
 0x20e   :  { %v819_v28 = vpop.eup %818 }
 0x20f   :  { %v411_v29 = vmul.f32 %v819_v28, %v378_v15 }
 0x210   :  { %v821_v31 = vpop.eup %820 }
 0x211   :  { %762 = vmatprep.mubr.msk.f32.mxu0 %vm302_vm1, %v411_v29  ;;  %v412_v34 = vmul.f32 %v821_v31, %v382_v18  ;;  %v1149_v28 = vmul.u32.u64.low 3817748708, %v708_v26  ;;  %v1150_v29 = vmul.u32.u64.high 3817748708, %v708_v26, %v1149_v28 }
 0x212   :  { %v823_v32 = vpop.eup %822  ;;  %524 = vmatmul.mubr.f32.vlgmr.msra.gmra.mxu0 %v410_v30 }
 0x213   :  { %v413_v33 = vmul.f32 %v823_v32, %v384_v20 }
 0x215   :  { %763 = vmatprep.mubr.msk.f32.mxu0 %vm302_vm1, %v413_v33 }
 0x216   :  { %529 = vmatmul.mubr.f32.gmra.mxu0 %v412_v34 }
 0x2d2   :  { %v525_v37 = vpop.f32.mrf.mxu0 }
 0x2d3   :  { %v1139_v38 = vadd.f32 %v761_v35, %v525_v37 }
 0x2d4   :  { %v527_v39 = vpop.f32.mrf.mxu0 }
 0x2d5   :  { %v617_v40 = vsub.f32 %v766_v36, %v1139_v38 }
 0x2d6   :  { %v530_v41 = vpop.f32.mrf.mxu0 }
 0x2d7   :  { %v625_v42 = vand.u32 2147483647, %v617_v40  ;;  %v1142_v43 = vadd.f32 %v761_v35, %v530_v41  ;;  %v619_v62 = vmax.f32 %v617_v40, 0.0  ;;  %vm621_vm3 = vcmp.ne.f32.partialorder %v617_v40, %v617_v40 }
 0x2d8   :  { %v532_v44 = vpop.f32.mrf.mxu0  ;;  %v715_v35 = vshrl.u32 %v1150_v29, 4 }
 0x2d9   :  { %v627_v45 = vsub.f32 0.0, %v625_v42  ;;  %v618_v46 = vsub.f32 %v766_v36, %v1142_v43 }
 0x2db   :  { %v629_v47 = vmul.f32 1.442695, %v627_v45  ;;  %v626_v48 = vand.u32 2147483647, %v618_v46  ;;  %v620_v0 = vmax.f32 %v618_v46, 0.0  ;;  %vm622_vm5 = vcmp.ne.f32.partialorder %v618_v46, %v618_v46 }
 0x2dc   :  { %v716_v45 = vmul.u32 18, %v715_v35 }
 0x2dd   :  { %824 = vpow2.f32 %v629_v47  ;;  %v628_v49 = vsub.f32 0.0, %v626_v48 }
 0x2df   :  { %v631_v5 = vmul.f32 1.442695, %v628_v49 }
 0x2e1   :  { %826 = vpow2.f32 %v631_v5 }
 0x2ea   :  { %v825_v50 = vpop.eup %824 }
 0x2eb   :  { %v633_v51 = vadd.f32 1.0, %v825_v50  ;;  %v636_v54 = vmul.f32 -0.5, %v825_v50  ;;  %v639_v57 = vand.u32 2147483647, %v825_v50 }
 0x2ed   :  { %828 = vlog2.f32 %v633_v51  ;;  %v637_v55 = vadd.f32 1.0, %v636_v54  ;;  %vm640_vm2 = vcmp.lt.f32.partialorder %v639_v57, 0.0004427343 }
 0x2ee   :  { %v827_v52 = vpop.eup %826 }
 0x2ef   :  { %v642_v53 = vadd.f32 1.0, %v827_v52  ;;  %v645_v56 = vmul.f32 -0.5, %v827_v52  ;;  %v638_v60 = vmul.f32 %v825_v50, %v637_v55  ;;  %v648_v63 = vand.u32 2147483647, %v827_v52 }
 0x2f1   :  { %830 = vlog2.f32 %v642_v53  ;;  %v646_v61 = vadd.f32 1.0, %v645_v56  ;;  %vm649_vm4 = vcmp.lt.f32.partialorder %v648_v63, 0.0004427343  ;;  %v717_v53 = vsub.s32 %v708_v26, %v716_v45 }
 0x2f3   :  { %v647_v6 = vmul.f32 %v827_v52, %v646_v61  ;;  %vm720_vm10 = vcmp.ne.s32.totalorder %v717_v53, 0  ;;  %vm721_vm11 = vcmp.lt.s32.totalorder %v717_v53, 0  ;;  %v723_v57 = vadd.s32 18, %v717_v53 }
 0x2f4   :  { %vm722_vm12 = vmand %vm721_vm11, %vm720_vm10 }
 0x2fa   :  { %v829_v58 = vpop.eup %828 }
 0x2fb   :  { %v635_v59 = vmul.f32 0.6931472, %v829_v58  ;;  %v778_v58 = vpop.f32.mrf.mxu1 }
 0x2fd   :  { %v641_v1 = vsel %vm640_vm2, %v638_v60, %v635_v59  ;;  %v724_v59 = vsel %vm722_vm12, %v723_v57, %v717_v53  ;;  %v600_v60 = vpop.f32.mrf.mxu1 }
 0x2fe   :  { %v831_v2 = vpop.eup %830  ;;  %v651_v3 = vadd.f32 %v641_v1, %v619_v62  ;;  %vm725_vm13 = vcmp.lt.s32.totalorder %v724_v59, 9  ;;  %v609_v61 = vadd.f32 %v600_v60, %v1139_v38  ;;  %v610_v1 = vadd.f32 %v778_v58, %v1142_v43 }
 0x2ff   :  { %v644_v4 = vmul.f32 0.6931472, %v831_v2 }
 0x300   :  { %v653_v8 = vsel %vm621_vm3, %v617_v40, %v651_v3 }
 0x301   :  { %v655_v13 = vsub.f32 %v766_v36, %v653_v8  ;;  %v650_v15 = vsel %vm649_vm4, %v647_v6, %v644_v4 }
 0x302   :  { %v652_v16 = vadd.f32 %v650_v15, %v620_v0 }
 0x303   :  { %v663_v17 = vsub.f32 %v655_v13, %v767_v7 }
 0x304   :  { %v654_v18 = vsel %vm622_vm5, %v618_v46, %v652_v16 }
 0x305   :  { %v671_v12 = vand.u32 2147483647, %v663_v17  ;;  %v656_v19 = vsub.f32 %v766_v36, %v654_v18  ;;  %v665_v40 = vmax.f32 %v663_v17, 0.0  ;;  %vm667_vm7 = vcmp.ne.f32.partialorder %v663_v17, %v663_v17 }
 0x307   :  { %v673_v20 = vsub.f32 0.0, %v671_v12  ;;  %v664_v21 = vsub.f32 %v656_v19, %v767_v7 }
 0x309   :  { %v675_v11 = vmul.f32 1.442695, %v673_v20  ;;  %v672_v22 = vand.u32 2147483647, %v664_v21  ;;  %v666_v49 = vmax.f32 %v664_v21, 0.0  ;;  %vm668_vm9 = vcmp.ne.f32.partialorder %v664_v21, %v664_v21 }
 0x30b   :  { %832 = vpow2.f32 %v675_v11  ;;  %v674_v10 = vsub.f32 0.0, %v672_v22 }
 0x30d   :  { %v677_v14 = vmul.f32 1.442695, %v674_v10 }
 0x30f   :  { %834 = vpow2.f32 %v677_v14 }
 0x318   :  { %v833_v23 = vpop.eup %832 }
 0x319   :  { %v679_v24 = vadd.f32 1.0, %v833_v23  ;;  %v682_v30 = vmul.f32 -0.5, %v833_v23  ;;  %v685_v33 = vand.u32 2147483647, %v833_v23 }
 0x31b   :  { %836 = vlog2.f32 %v679_v24  ;;  %v683_v31 = vadd.f32 1.0, %v682_v30  ;;  %vm686_vm6 = vcmp.lt.f32.partialorder %v685_v33, 0.0004427343 }
 0x31c   :  { %v835_v25 = vpop.eup %834 }
 0x31d   :  { %v688_v27 = vadd.f32 1.0, %v835_v25  ;;  %v691_v32 = vmul.f32 -0.5, %v835_v25  ;;  %v684_v37 = vmul.f32 %v833_v23, %v683_v31  ;;  %v694_v41 = vand.u32 2147483647, %v835_v25 }
 0x31f   :  { %838 = vlog2.f32 %v688_v27  ;;  %v692_v39 = vadd.f32 1.0, %v691_v32  ;;  %vm695_vm8 = vcmp.lt.f32.partialorder %v694_v41, 0.0004427343 }
 0x321   :  { %v693_v47 = vmul.f32 %v835_v25, %v692_v39 }
 0x328   :  { %v837_v34 = vpop.eup %836 }
 0x329   :  { %v681_v36 = vmul.f32 0.6931472, %v837_v34 }
 0x32b   :  { %v687_v42 = vsel %vm686_vm6, %v684_v37, %v681_v36 }
 0x32c   :  { %v839_v9 = vpop.eup %838  ;;  %v697_v44 = vadd.f32 %v687_v42, %v665_v40 }
 0x32d   :  { %v690_v46 = vmul.f32 0.6931472, %v839_v9 }
 0x32e   :  { %v699_v48 = vsel %vm667_vm7, %v663_v17, %v697_v44 }
 0x32f   :  { %v701_v5 = vadd.f32 %v767_v7, %v699_v48  ;;  %v696_v50 = vsel %vm695_vm8, %v693_v47, %v690_v46 }
 0x330   :  { %v698_v51 = vadd.f32 %v696_v50, %v666_v49 }
 0x331   :  { %v703_v52 = vmul.f32 1.442695, %v701_v5 }
 0x332   :  { %v700_v54 = vsel %vm668_vm9, %v664_v21, %v698_v51 }
 0x333   :  { %840 = vpow2.f32 %v703_v52  ;;  %v702_v55 = vadd.f32 %v767_v7, %v700_v54 }
 0x335   :  { %v705_v56 = vmul.f32 1.442695, %v702_v55 }
 0x337   :  { %842 = vpow2.f32 %v705_v56 }
 0x340   :  { %v841_v62 = vpop.eup %840 }
 0x341   :  { %v726_v63 = vsel %vm725_vm13, %v609_v61, %v841_v62 }
 0x342   :  { %728 = vst [vmem:[#allocation11] sm:$0xff] %v726_v63 }
 0x344   :  { %v843_v2 = vpop.eup %842 }
 0x345   :  { %v727_v3 = vsel %vm725_vm13, %v610_v1, %v843_v2 }
 0x346   :  { %729 = vst [vmem:[#allocation11 + $0x8] sm:$0xff] %v727_v3 }
 0x347   :  { %955 = shalt.err (!%p952_p1)
}
 0x348   :  { %741 = dma.vmem_to_hbm [thread:$0]  %s736_s23, 256, %s1171_s10, [#allocation4], %s977_s25, %s977_s25, %s978_s26  }
 0x349   :  { %970 = dma.done.wait [#allocation4], 256  }
 0x34a   :  { %971 = vsyncadd [#allocation4], 4294967040 }
 0x34b   :  { %745 = vsyncpa [#allocation3], 1 }
 0x34c   :  { %746 = vsyncpa [#allocation6], 1 }
 0x34d   :  { %747 = vsyncpa [#allocation9], 1 }
 0x34e   :  { %748 = vsyncpa [#allocation4], 1 }

</bundles_post_ra>
